<compile_context>
chip_gen: v7x
topology: tpu7x:2x2x1
jax: 0.10.0
libtpu: 0.0.40
codegen_flags: <defaults>
</compile_context>

<pallas_src>
import functools
import math

import numpy as np

import jax
import jax.numpy as jnp
from jax import lax
from jax.experimental import pallas as pl
from jax.experimental.pallas import tpu as pltpu

LANE = 128  # TPU lane width; channel dims are zero-padded to this.


def make_divisible(v, divisor):
    return int(math.ceil(v / divisor) * divisor)


# ---------------- one-time parameter folding (host side, off the hot path) ----

def grouped_pointwise_dense(w, g):
    """torch weight (cout, cin//g, 1, 1) -> dense block-diagonal (cin, cout)."""
    cout, cinpg = w.shape[0], w.shape[1]
    coutpg = cout // g
    w3d = w[:, :, 0, 0].reshape(g, coutpg, cinpg)            # (g, coutpg, cinpg)
    eye = jnp.eye(g, dtype=w.dtype)
    dense = jnp.einsum('gba,gh->hagb', w3d, eye)             # (g, cinpg, g, coutpg)
    return dense.reshape(g * cinpg, cout)


def grouped_spatial_dense(w, g):
    """torch weight (cout, cin//g, k, k) -> dense block-diagonal (k, k, cin, cout)."""
    cout, cinpg, k, _ = w.shape
    coutpg = cout // g
    w5 = w.reshape(g, coutpg, cinpg, k, k)                   # (g, coutpg, cinpg, ky, kx)
    eye = jnp.eye(g, dtype=w.dtype)
    dense = jnp.einsum('gbayx,gh->yxhagb', w5, eye)          # (ky, kx, g, cinpg, g, coutpg)
    return dense.reshape(k, k, g * cinpg, cout)


def fold_bn(gamma, beta, mean, var, eps=1e-5):
    scale = gamma / jnp.sqrt(var + eps)
    bias = beta - mean * scale
    return scale.reshape(1, -1), bias.reshape(1, -1)


def prepare_shufflenet_params(params, g=3, k=3):
    """Fold the whole block into two dense matmuls + per-channel bias terms.

    Call once per weight set and cache the result (per-call cost is zero).
      stage 1: W1f (C1p, CP) bf16 = grouped 1x1 conv (block-diag) with BN1's
               scale folded into its columns; b1 = BN1 bias (f32).
      stage 2: W2f (k*k*CP, CP) bf16 with
               - ChannelShuffle folded into its input-channel permutation
               - BN2, the grouped 1x1 conv (w3) and BN3 folded into its output
                 columns (no nonlinearity in between -> exact algebra)
               b2f = fused bias (f32).
    All channel dims are zero-padded to LANE so every load/store and every
    im2col chunk in the kernel is 128-lane aligned.
    """
    w1 = grouped_pointwise_dense(params['w1'], g)            # (C1, C_)
    s1, b1 = fold_bn(*params['bn1'])                         # (1, C_)
    w2 = grouped_spatial_dense(params['w2'], g)              # (k, k, C_, C_)
    s2, b2 = fold_bn(*params['bn2'])
    w3 = grouped_pointwise_dense(params['w3'], g)            # (C_, C2)
    s3, b3 = fold_bn(*params['bn3'])

    C1, C_ = w1.shape
    C2 = w3.shape[1]
    assert max(C1, C_, C2) <= LANE, "toy kernel assumes channels <= 128"
    assert C1 == C2, "stride-1 residual path requires c2 == c1"

    # Fold BN1's per-channel scale into the 1x1 conv columns (exact: no bias
    # inside the conv), leaving only the bias + ReLU as kernel-side VPU work.
    w1f = w1 * s1                                             # (C1, C_)

    # Fold ChannelShuffle(g): conv2 consumes shuffled channels -> permute its
    # input-channel axis so it applies directly to the unshuffled activations.
    j = np.arange(C_)
    perm = (j % g) * (C_ // g) + (j // g)
    w2 = w2[:, :, np.argsort(perm), :]

    # Fuse BN2 + 1x1 conv (w3) + BN3 into the KxK weights / bias (exact).
    w2f = jnp.einsum('yxio,oc->yxic', w2 * s2[0][None, None, None, :], w3)
    w2f = w2f * s3[0][None, None, None, :]                    # (k, k, C_, C2)
    b2f = (b2 @ w3) * s3 + b3                                  # (1, C2)

    # Zero-pad channel dims to the lane width; cast matmul operands to bf16.
    CP = LANE
    w1p = jnp.pad(w1f, ((0, CP - C1), (0, CP - C_))).astype(jnp.bfloat16)
    b1p = jnp.pad(b1, ((0, 0), (0, CP - C_)))
    w2p = jnp.pad(w2f, ((0, 0), (0, 0), (0, CP - C_), (0, CP - C2)))
    w2p = w2p.reshape(k * k * CP, CP).astype(jnp.bfloat16)
    b2p = jnp.pad(b2f, ((0, 0), (0, CP - C2)))

    return dict(w1=w1p, b1=b1p, w2=w2p, b2=b2p, meta=(k, C1, C_, C2, CP))


# ---------------- roll-convention probe (runs once, cached) -------------------

@functools.lru_cache(maxsize=1)
def _pltpu_roll_matches_numpy():
    """pltpu.roll is expected to match jnp.roll; verify once at runtime so the
    im2col tap construction is correct regardless of the rotate convention.
    (Call outside of jit.)"""
    def probe(x_ref, o_ref):
        o_ref[...] = pltpu.roll(x_ref[...], shift=1, axis=0)

    x = jnp.arange(8 * 128, dtype=jnp.float32).reshape(8, 128)
    y = pl.pallas_call(probe,
                       out_shape=jax.ShapeDtypeStruct((8, 128), jnp.float32))(x)
    return bool(jnp.array_equal(y, jnp.roll(x, 1, axis=0)))


# ---------------- the Pallas kernel -------------------------------------------

def _make_kernel(k, roll_sign):
    K = k
    P = K // 2

    def kernel(x_ref, w1_ref, b1_ref, w2_ref, b2_ref, o_ref, col_ref):
        _, H, W, CP = x_ref.shape
        HW = H * W

        x = x_ref[0].reshape(HW, CP)                          # f32, lane-dense

        # ---- stage 1: grouped 1x1 conv (BN1 scale pre-folded) + bias + ReLU --
        h = jnp.dot(x.astype(jnp.bfloat16), w1_ref[...],
                    preferred_element_type=jnp.float32)
        h = jnp.maximum(h + b1_ref[...], 0.0)                 # f32 VPU math

        # ---- stage 2: lane-aligned im2col via XLU rolls + fused halo masks ----
        # Pixel y/x coordinates (hoisted iotas); each nonzero offset gets a
        # single precomputed validity mask, combined once per tap.
        yy = lax.broadcasted_iota(jnp.int32, (H, W, CP), 0).reshape(HW, CP)
        xx = lax.broadcasted_iota(jnp.int32, (H, W, CP), 1).reshape(HW, CP)
        ymask = {dy: (yy >= -dy) if dy < 0 else (yy < H - dy)
                 for dy in range(-P, P + 1) if dy != 0}
        xmask = {dx: (xx >= -dx) if dx < 0 else (xx < W - dx)
                 for dx in range(-P, P + 1) if dx != 0}

        for ky in range(K):
            for kx in range(K):
                dy, dx = ky - P, kx - P
                d = dy * W + dx
                tap = h if d == 0 else pltpu.roll(
                    h, shift=(-d * roll_sign) % HW, axis=0)
                keep = None
                if dy != 0:
                    keep = ymask[dy]
                if dx != 0:
                    keep = xmask[dx] if keep is None else (keep & xmask[dx])
                if keep is not None:
                    tap = jnp.where(keep, tap, 0.0)
                t = ky * K + kx
                # One aligned, unmasked 128-lane store per tap.
                col_ref[:, t * CP:(t + 1) * CP] = tap.astype(col_ref.dtype)

        # ---- single big-K matmul: KxK conv + BN2 + 1x1 conv + BN3 (all fused) -
        acc = jnp.dot(col_ref[...], w2_ref[...],
                      preferred_element_type=jnp.float32)

        # ---- residual (stride-1: LightShortcutLayer == identity) --------------
        # Re-read x from VMEM (cheap vld) instead of keeping it live across the
        # matmuls -> less register pressure / no spills.
        out = acc + b2_ref[...] + x_ref[0].reshape(HW, CP)
        o_ref[...] = out.reshape(1, H, W, CP).astype(o_ref.dtype)

    return kernel


# ---------------- wrapper (NHWC, channel-padded) ------------------------------

def shufflenet_block_pallas(x_nhwc, folded):
    """x_nhwc: (B, H, W, C1) float32.  `folded` from prepare_shufflenet_params."""
    k, C1, C_, C2, CP = folded['meta']
    B, H, W, Cin = x_nhwc.shape
    assert Cin == C1
    HW, KK = H * W, k * k

    # Lane-dense input (zero channel padding); in production this padded NHWC
    # layout would be carried between blocks instead of re-padding per call.
    xp = jnp.pad(x_nhwc, ((0, 0), (0, 0), (0, 0), (0, CP - C1)))

    roll_sign = 1 if _pltpu_roll_matches_numpy() else -1
    kernel = _make_kernel(k, roll_sign)

    outp = pl.pallas_call(
        kernel,
        out_shape=jax.ShapeDtypeStruct((B, H, W, CP), x_nhwc.dtype),
        grid_spec=pltpu.PrefetchScalarGridSpec(
            num_scalar_prefetch=0,
            grid=(B,),
            in_specs=[
                pl.BlockSpec((1, H, W, CP), lambda b: (b, 0, 0, 0)),   # x
                pl.BlockSpec((CP, CP), lambda b: (0, 0)),              # w1 fused bf16
                pl.BlockSpec((1, CP), lambda b: (0, 0)),               # b1
                pl.BlockSpec((KK * CP, CP), lambda b: (0, 0)),         # w2 fused bf16
                pl.BlockSpec((1, CP), lambda b: (0, 0)),               # b2 fused
            ],
            out_specs=pl.BlockSpec((1, H, W, CP), lambda b: (b, 0, 0, 0)),
            scratch_shapes=[
                pltpu.VMEM((HW, KK * CP), jnp.bfloat16),               # im2col
            ],
        ),
        compiler_params=pltpu.CompilerParams(
            dimension_semantics=("parallel",),
            vmem_limit_bytes=32 * 1024 * 1024,
        ),
    )(xp, folded['w1'], folded['b1'], folded['w2'], folded['b2'])

    return outp[..., :C2]


# ---------------- pure-JAX reference (validation only) ------------------------

def shufflenet_block_ref(x, params, g=3, k=3, s=1):
    def conv(x, w, stride, pad, groups):
        return jax.lax.conv_general_dilated(
            x, w, (stride, stride), [(pad, pad), (pad, pad)],
            dimension_numbers=('NCHW', 'OIHW', 'NCHW'),
            feature_group_count=groups)

    def bn(x, gamma, beta, mean, var, eps=1e-5):
        scale = gamma / jnp.sqrt(var + eps)
        bias = beta - mean * scale
        return x * scale[None, :, None, None] + bias[None, :, None, None]

    def shuffle(x, g):
        b, c, h, w = x.shape
        return x.reshape(b, g, c // g, h, w).transpose(0, 2, 1, 3, 4).reshape(b, c, h, w)

    h = jnp.maximum(bn(conv(x, params['w1'], 1, 0, g), *params['bn1']), 0.0)
    h = shuffle(h, g)
    h = bn(conv(h, params['w2'], s, k // 2, g), *params['bn2'])
    h = bn(conv(h, params['w3'], 1, 0, g), *params['bn3'])
    return x + h


if __name__ == "__main__":
    B, C1, H, W = 2, 12, 16, 16
    g, k, f, s = 3, 3, 2, 1
    c2 = C1                               # s == 1 -> c2 = c1 (not halved)
    c_ = make_divisible(f * C1, 4)        # 24

    key = jax.random.PRNGKey(0)
    keys = jax.random.split(key, 16)
    x = jax.random.normal(keys[0], (B, C1, H, W), jnp.float32)   # NCHW (spec)

    def bn_params(k1, k2, k3, k4, c):
        gamma = 1.0 + 0.1 * jax.random.normal(k1, (c,), jnp.float32)
        beta = 0.1 * jax.random.normal(k2, (c,), jnp.float32)
        mean = 0.1 * jax.random.normal(k3, (c,), jnp.float32)
        var = jnp.abs(jax.random.normal(k4, (c,), jnp.float32)) + 0.5
        return gamma, beta, mean, var

    params = {
        'w1': 0.2 * jax.random.normal(keys[1], (c_, C1 // g, 1, 1), jnp.float32),
        'bn1': bn_params(keys[2], keys[3], keys[4], keys[5], c_),
        'w2': 0.2 * jax.random.normal(keys[6], (c_, c_ // g, k, k), jnp.float32),
        'bn2': bn_params(keys[7], keys[8], keys[9], keys[10], c_),
        'w3': 0.2 * jax.random.normal(keys[11], (c2, c_ // g, 1, 1), jnp.float32),
        'bn3': bn_params(keys[12], keys[13], keys[14], keys[15], c2),
    }

    # One-time weight folding (cache/reuse across calls).
    folded = prepare_shufflenet_params(params, g=g, k=k)

    # The kernel is NHWC-native; the transposes below are test-harness only.
    x_nhwc = jnp.transpose(x, (0, 2, 3, 1))
    out_nhwc = jax.block_until_ready(shufflenet_block_pallas(x_nhwc, folded))
    out = jnp.transpose(out_nhwc, (0, 3, 1, 2))

    ref = shufflenet_block_ref(x, params, g=g, k=k, s=s)
    err = float(jnp.max(jnp.abs(out - ref)))
    # Tolerance sized for bf16 matmul operands with f32 accumulation
    # (an all-f32 path agrees to ~1e-5).
    assert err < 3e-2, f"mismatch vs reference: max abs err {err}"
    print("KERNEL_OK")
</pallas_src>

<mosaic_0001>
module attributes {stable_mosaic.version = 11 : i64} {
  func.func @probe(%arg0: memref<8x128xf32, #tpu.memory_space<vmem>>, %arg1: memref<8x128xf32, #tpu.memory_space<vmem>>) attributes {dimension_semantics = [], scalar_prefetch = 0 : i64, scratch_operands = 0 : i64, tpu.core_type = #tpu.core_type<tc>} {
    %c0 = arith.constant 0 : index
    %c0_0 = arith.constant 0 : index
    %0 = vector.load %arg0[%c0, %c0_0] : memref<8x128xf32, #tpu.memory_space<vmem>>, vector<8x128xf32>
    %c1_i32 = arith.constant 1 : i32
    %1 = tpu.dynamic_rotate %0 by %c1_i32 dim 0 : vector<8x128xf32>, i32 -> vector<8x128xf32>
    %c0_1 = arith.constant 0 : index
    %c0_2 = arith.constant 0 : index
    %2 = vector.load %arg1[%c0_1, %c0_2] : memref<8x128xf32, #tpu.memory_space<vmem>>, vector<8x128xf32>
    tpu.vector_store %arg1[%c0_1, %c0_2], %1 {strides = array<i32>} : memref<8x128xf32, #tpu.memory_space<vmem>>, vector<8x128xf32>,
    return
  }
}

</mosaic_0001>

<bundles_post_ra>
// kernel: tpu_custom_call.1
= control target key start
LH: loop header
LB: loop body
LE: loop exit
PB: predicated region body
PF: predicated region fallthrough
CT: control target
= control target key end

     0   :  { %6 = vsyncpa [#allocation3], 0  ;;  %s125_s0 = inlined_call_operand.hbm [shape: f32[8,128], index: 0, kind: input, shape index: {}]   ;;  %s126_s1 = inlined_call_operand.hbm [shape: f32[8,128], index: 1, kind: output, shape index: {}]  }
   0x1   :  { %7 = vsyncpa [#allocation4], 0  ;;  %s89_s6 = smov [#allocation2]   ;;  %s41_s10 = scalar_lea.hbm %s125_s0, 128 }
   0x2   :  { %s14_s7 = sshll.u32 %s89_s6, 4  ;;  %p42_p0 = scmp.ne.s32.totalorder %s125_s0, %s41_s10  ;;  %s15_s7 = int_to_ptr.vmem [resolvable:$true] %s14_s7 }
   0x3   :  { %p45_p1 = scmp.lt.u32.totalorder %s41_s10, %s125_s0 }
   0x5   :  { %p47_p2 = pnand %p45_p1, %p42_p0 }
   0x7   :  { %50 = shalt.err (!%p47_p2)
}
   0x8   :  { %s51_s15 = scalar_lea.vmem %s15_s7, 128  ;;  %p56_p4 = scmp.lt.s32.totalorder %s15_s7, %s15_s7 }
   0x9   :  { %p52_p3 = scmp.ne.s32.totalorder %s15_s7, %s51_s15  ;;  %p57_p5 = scmp.lt.s32.totalorder %s51_s15, %s51_s15 }
   0xb   :  { %p58_p6 = por %p57_p5, %p56_p4 }
   0xd   :  { %p59_p7 = pnand %p58_p6, %p52_p3 }
   0xf   :  { %62 = shalt.err (!%p59_p7)
}
  0x10   :  { %17 = dma.hbm_to_vmem [thread:$0]  %s125_s0, 128, %s15_s7, [#allocation3]  }
  0x11   :  { %85 = dma.done.wait [#allocation3], 128  }
  0x12   :  { %86 = vsyncadd [#allocation3], 4294967168  ;;  %s90_s18 = smov [#allocation5]   ;;  %v21_v0 = vld [vmem:[#allocation2] sm:$0xff] }
  0x13   :  { %s30_s19 = sshll.u32 %s90_s18, 4  ;;  %v22_v1 = vrot.slane %v21_v0, 7  ;;  %s31_s19 = int_to_ptr.vmem [resolvable:$true] %s30_s19 }
  0x14   :  { %s63_s20 = scalar_lea.vmem %s31_s19, 128  ;;  %p68_p9 = scmp.lt.s32.totalorder %s31_s19, %s31_s19 }
  0x15   :  { %23 = vst [vmem:[#allocation5] sm:$0xff] %v22_v1  ;;  %p64_p8 = scmp.ne.s32.totalorder %s31_s19, %s63_s20  ;;  %p69_p10 = scmp.lt.s32.totalorder %s63_s20, %s63_s20 }
  0x17   :  { %p70_p11 = por %p69_p10, %p68_p9 }
  0x19   :  { %p71_p12 = pnand %p70_p11, %p64_p8 }
  0x1b   :  { %74 = shalt.err (!%p71_p12)
}
  0x1c   :  { %s75_s23 = scalar_lea.hbm %s126_s1, 128 }
  0x1d   :  { %p76_p13 = scmp.ne.s32.totalorder %s126_s1, %s75_s23  ;;  %p79_p0 = scmp.lt.u32.totalorder %s75_s23, %s126_s1 }
  0x1f   :  { %p81_p1 = pnand %p79_p0, %p76_p13 }
  0x21   :  { %84 = shalt.err (!%p81_p1)
}
  0x22   :  { %33 = dma.vmem_to_hbm [thread:$0]  %s31_s19, 128, %s126_s1, [#allocation4]  }
  0x23   :  { %87 = dma.done.wait [#allocation4], 128  }
  0x24   :  { %88 = vsyncadd [#allocation4], 4294967168 }
  0x25   :  { %37 = vsyncpa [#allocation3], 1 }
  0x26   :  { %38 = vsyncpa [#allocation4], 1 }

</bundles_post_ra>
